<compile_context>
chip_gen: v5e
topology: v5e:2x2
jax: 0.10.0
libtpu: 0.0.40
codegen_flags: <defaults>
</compile_context>

<pallas_src>
import jax
import jax.numpy as jnp
from jax.experimental import pallas as pl
from jax.experimental.pallas import tpu as pltpu

NUM_CLASSES = 10          # CIFAR-10
IN_FEATURES = 2048        # ResNet50 backbone output channels


def fc_head_kernel(x_ref, w_ref, b_ref, o_ref):
    """Single-shot fused flatten->Linear head: o = x @ w + b.

    x_ref: (N, 2048) f32   -- cast to bf16 in-kernel (folds the convert here
                              instead of a standalone XLA launch).
    w_ref: (2048, C) bf16  -- pre-cast at param-prep time, unpadded.
    b_ref: (1, C)    f32
    MXU accumulates in f32; bias added post-accumulation; f32 logits stored.
    """
    x_bf = x_ref[...].astype(jnp.bfloat16)
    acc = jnp.dot(x_bf, w_ref[...], preferred_element_type=jnp.float32)
    o_ref[...] = acc + b_ref[...]


def prepare_fc_params(w_torch_layout, b):
    """One-time param prep (hoisted out of the per-call path).

    w_torch_layout: (num_classes, 2048) f32  (torch nn.Linear weight layout)
    b:              (num_classes,)     f32
    returns kernel-ready (2048, num_classes) bf16 weight and (1, num_classes)
    f32 bias.
    """
    w_kernel = jnp.asarray(w_torch_layout, jnp.float32).T.astype(jnp.bfloat16)
    b_kernel = jnp.asarray(b, jnp.float32).reshape(1, -1)
    return w_kernel, b_kernel


def cifarnet_head(backbone_features_nchw, w_kernel, b_kernel):
    """backbone_features_nchw: (N, 2048, 1, 1) f32 (ResNet50 backbone output)
       w_kernel:               (2048, num_classes) bf16 (pre-prepared)
       b_kernel:               (1, num_classes) f32 (pre-prepared)
       returns logits          (N, num_classes) f32
    """
    n = backbone_features_nchw.shape[0]
    x = backbone_features_nchw.reshape(n, -1)          # torch.flatten(x, 1): metadata-only
    assert x.shape[1] == IN_FEATURES
    c = w_kernel.shape[1]

    cost = pl.CostEstimate(
        flops=2 * n * IN_FEATURES * c,
        bytes_accessed=(n * IN_FEATURES * 4      # activations f32 in
                        + IN_FEATURES * c * 2    # weight bf16 in (dominant stream)
                        + c * 4                  # bias f32 in
                        + n * c * 4),            # logits f32 out
        transcendentals=0,
    )

    # Whole problem (<100 KB) is VMEM-resident on every generation; single-shot
    # kernel, no K-reduction grid or accumulator scratch.
    return pl.pallas_call(
        fc_head_kernel,
        out_shape=jax.ShapeDtypeStruct((n, c), jnp.float32),
        grid=(1,),
        in_specs=[
            pl.BlockSpec((n, IN_FEATURES), lambda i: (0, 0)),   # activations (resident)
            pl.BlockSpec((IN_FEATURES, c), lambda i: (0, 0)),   # weights (resident, full dims)
            pl.BlockSpec((1, c), lambda i: (0, 0)),             # bias (resident, full dims)
        ],
        out_specs=pl.BlockSpec((n, c), lambda i: (0, 0)),        # (N, C) direct, no pad/slice
        cost_estimate=cost,
        compiler_params=pltpu.CompilerParams(
            dimension_semantics=("arbitrary",)),
    )(x, w_kernel, b_kernel)


def init_params(key, num_classes=NUM_CLASSES):
    """Deterministic init matching CifarNet.weight_init for the fc layer:
       xavier_normal_ on weight, zeros on bias (torch (out, in) layout)."""
    fan_in, fan_out = IN_FEATURES, num_classes
    std = (2.0 / (fan_in + fan_out)) ** 0.5
    w = jax.random.normal(key, (fan_out, fan_in), dtype=jnp.float32) * std
    b = jnp.zeros((fan_out,), dtype=jnp.float32)
    return w, b


if __name__ == "__main__":
    key = jax.random.PRNGKey(0)
    k_feat, k_w = jax.random.split(key)

    batch = 2
    # Synthetic stand-in for the (externally-defined) ResNet50 backbone output,
    # NCHW (N, 2048, 1, 1) as produced by the backbone's global average pool.
    features = jax.random.normal(
        k_feat, (batch, IN_FEATURES, 1, 1), dtype=jnp.float32
    )

    w_torch, b = init_params(k_w)
    # One-time prep (hoisted out of the forward path).
    w_kernel, b_kernel = prepare_fc_params(w_torch, b)

    logits = jax.block_until_ready(cifarnet_head(features, w_kernel, b_kernel))

    # Reference in plain JAX with the same bf16 operand rounding as the kernel.
    x = features.reshape(batch, -1)
    x_bf = x.astype(jnp.bfloat16).astype(jnp.float32)
    w_bf = w_torch.T.astype(jnp.bfloat16).astype(jnp.float32)
    ref = x_bf @ w_bf + b

    assert logits.shape == (batch, NUM_CLASSES)
    assert jnp.allclose(logits, ref, atol=1e-2, rtol=1e-2)

    print("KERNEL_OK")
</pallas_src>

<mosaic_0001>
module attributes {stable_mosaic.version = 11 : i64} {
  func.func @fc_head_kernel(%arg0: i32, %arg1: memref<2x2048xf32, #tpu.memory_space<vmem>>, %arg2: memref<2048x10xbf16, #tpu.memory_space<vmem>>, %arg3: memref<1x10xf32, #tpu.memory_space<vmem>>, %arg4: memref<2x10xf32, #tpu.memory_space<vmem>>) attributes {dimension_semantics = [#tpu.dimension_semantics<arbitrary>], iteration_bounds = array<i64: 1>, scalar_prefetch = 0 : i64, scratch_operands = 0 : i64, tpu.core_type = #tpu.core_type<tc>, window_params = [{pipeline_mode = #tpu.pipeline_mode<synchronous>, transform_indices = @transform_0, window_bounds = array<i64: 2, 2048>}, {pipeline_mode = #tpu.pipeline_mode<synchronous>, transform_indices = @transform_1, window_bounds = array<i64: 2048, 10>}, {pipeline_mode = #tpu.pipeline_mode<synchronous>, transform_indices = @transform_2, window_bounds = array<i64: 1, 10>}, {pipeline_mode = #tpu.pipeline_mode<synchronous>, transform_indices = @transform_3, window_bounds = array<i64: 2, 10>}]} {
    %c0 = arith.constant 0 : index
    %c0_0 = arith.constant 0 : index
    %0 = vector.load %arg1[%c0, %c0_0] : memref<2x2048xf32, #tpu.memory_space<vmem>>, vector<2x2048xf32>
    %1 = arith.truncf %0 : vector<2x2048xf32> to vector<2x2048xbf16>
    %c0_1 = arith.constant 0 : index
    %c0_2 = arith.constant 0 : index
    %2 = vector.load %arg2[%c0_1, %c0_2] : memref<2048x10xbf16, #tpu.memory_space<vmem>>, vector<2048x10xbf16>
    %cst = arith.constant dense<0.000000e+00> : vector<2x10xf32>
    %3 = tpu.matmul %1, %2, %cst {dimension_numbers = #tpu.dot_dimension_numbers<[1], [0], [0], [1], [0, 0, 1, 1], [], []>} : vector<2x2048xbf16>, vector<2048x10xbf16>, vector<2x10xf32> -> vector<2x10xf32>
    %c0_3 = arith.constant 0 : index
    %c0_4 = arith.constant 0 : index
    %4 = vector.load %arg3[%c0_3, %c0_4] : memref<1x10xf32, #tpu.memory_space<vmem>>, vector<1x10xf32>
    %5 = vector.broadcast %4 : vector<1x10xf32> to vector<2x10xf32>
    %6 = arith.addf %3, %5 : vector<2x10xf32>
    %c0_5 = arith.constant 0 : index
    %c0_6 = arith.constant 0 : index
    %7 = vector.load %arg4[%c0_5, %c0_6] : memref<2x10xf32, #tpu.memory_space<vmem>>, vector<2x10xf32>
    tpu.vector_store %arg4[%c0_5, %c0_6], %6 {strides = array<i32>} : memref<2x10xf32, #tpu.memory_space<vmem>>, vector<2x10xf32>,
    return
  }
  func.func @transform_0(%arg0: i32) -> (i32, i32) {
    %c0_i32 = arith.constant 0 : i32
    %c0_i32_0 = arith.constant 0 : i32
    %c0_i32_1 = arith.constant 0 : i32
    return %c0_i32, %c0_i32_0 : i32, i32
  }
  func.func @transform_1(%arg0: i32) -> (i32, i32) {
    %c0_i32 = arith.constant 0 : i32
    %c0_i32_0 = arith.constant 0 : i32
    %c0_i32_1 = arith.constant 0 : i32
    return %c0_i32, %c0_i32_0 : i32, i32
  }
  func.func @transform_2(%arg0: i32) -> (i32, i32) {
    %c0_i32 = arith.constant 0 : i32
    %c0_i32_0 = arith.constant 0 : i32
    %c0_i32_1 = arith.constant 0 : i32
    return %c0_i32, %c0_i32_0 : i32, i32
  }
  func.func @transform_3(%arg0: i32) -> (i32, i32) {
    %c0_i32 = arith.constant 0 : i32
    %c0_i32_0 = arith.constant 0 : i32
    %c0_i32_1 = arith.constant 0 : i32
    return %c0_i32, %c0_i32_0 : i32, i32
  }
}

</mosaic_0001>

<bundles_post_ra>
// kernel: tpu_custom_call.1
= control target key start
LH: loop header
LB: loop body
LE: loop exit
PB: predicated region body
PF: predicated region fallthrough
CT: control target
= control target key end

     0   :  { %s2437_s0 = inlined_call_operand.vmem [shape: f32[2,2048], index: 0, kind: input, shape index: {}]   ;;  %s2438_s1 = inlined_call_operand.vmem [shape: bf16[2048,10], index: 1, kind: input, shape index: {}]   ;;  %s2439_s2 = inlined_call_operand.vmem [shape: f32[1,10], index: 2, kind: input, shape index: {}]   ;;  %s2440_s3 = inlined_call_operand.hbm [shape: f32[2,10], index: 3, kind: output, shape index: {}]  }
   0x1   :  { %v1849_v0 = vld [vmem:[%s2438_s1 + $0x38] sm:$0xff]  ;;  %v1848_v4 = vld [vmem:[%s2438_s1 + $0x30] sm:$0xff]  ;;  %v1847_v8 = vld [vmem:[%s2438_s1 + $0x28] sm:$0xff] }
   0x2   :  { %v1857_v1 = vld [vmem:[%s2438_s1 + $0x78] sm:$0xff]  ;;  %1104 = vmatpush.bf16.msra.mxu0 %v1849_v0  ;;  %v1856_v5 = vld [vmem:[%s2438_s1 + $0x70] sm:$0xff]  ;;  %v1855_v9 = vld [vmem:[%s2438_s1 + $0x68] sm:$0xff] }
   0x3   :  { %v1865_v2 = vld [vmem:[%s2438_s1 + $0xb8] sm:$0xff]  ;;  %1117 = vmatpush.bf16.msra.mxu1 %v1857_v1  ;;  %v1864_v6 = vld [vmem:[%s2438_s1 + $0xb0] sm:$0xff]  ;;  %v1863_v10 = vld [vmem:[%s2438_s1 + $0xa8] sm:$0xff] }
   0x4   :  { %v1873_v3 = vld [vmem:[%s2438_s1 + $0xf8] sm:$0xff]  ;;  %1130 = vmatpush.bf16.msra.mxu2 %v1865_v2  ;;  %v1872_v7 = vld [vmem:[%s2438_s1 + $0xf0] sm:$0xff]  ;;  %v1871_v11 = vld [vmem:[%s2438_s1 + $0xe8] sm:$0xff] }
   0x5   :  { %1143 = vmatpush.bf16.msra.mxu3 %v1873_v3  ;;  %v1846_v12 = vld [vmem:[%s2438_s1 + $0x20] sm:$0xff]  ;;  %v1845_v16 = vld [vmem:[%s2438_s1 + $0x18] sm:$0xff]  ;;  %v1844_v20 = vld [vmem:[%s2438_s1 + $0x10] sm:$0xff] }
   0x6   :  { %1105 = vmatpush.bf16.msra.mxu0 %v1848_v4  ;;  %v1854_v13 = vld [vmem:[%s2438_s1 + $0x60] sm:$0xff]  ;;  %v1853_v17 = vld [vmem:[%s2438_s1 + $0x58] sm:$0xff]  ;;  %v1852_v21 = vld [vmem:[%s2438_s1 + $0x50] sm:$0xff] }
   0x7   :  { %1118 = vmatpush.bf16.msra.mxu1 %v1856_v5  ;;  %v1862_v14 = vld [vmem:[%s2438_s1 + $0xa0] sm:$0xff]  ;;  %v1861_v18 = vld [vmem:[%s2438_s1 + $0x98] sm:$0xff] }
   0x8   :  { %1131 = vmatpush.bf16.msra.mxu2 %v1864_v6  ;;  %v1870_v15 = vld [vmem:[%s2438_s1 + $0xe0] sm:$0xff]  ;;  %v1869_v19 = vld [vmem:[%s2438_s1 + $0xd8] sm:$0xff] }
   0x9   :  { %1144 = vmatpush.bf16.msra.mxu3 %v1872_v7  ;;  %v15_v22 = vld [vmem:[%s2437_s0] sm:$0xff] }
   0xa   :  { %1106 = vmatpush.bf16.msra.mxu0 %v1847_v8  ;;  %23 = vst [vmem:[#allocation1] ss:$4 sm:$0xff] %v15_v22 }
   0xb   :  { %1119 = vmatpush.bf16.msra.mxu1 %v1855_v9 }
   0xc   :  { %1132 = vmatpush.bf16.msra.mxu2 %v1863_v10 }
   0xd   :  { %1145 = vmatpush.bf16.msra.mxu3 %v1871_v11 }
   0xe   :  { %1107 = vmatpush.bf16.msra.mxu0 %v1846_v12 }
   0xf   :  { %1120 = vmatpush.bf16.msra.mxu1 %v1854_v13 }
  0x10   :  { %1133 = vmatpush.bf16.msra.mxu2 %v1862_v14 }
  0x11   :  { %1146 = vmatpush.bf16.msra.mxu3 %v1870_v15 }
  0x12   :  { %1108 = vmatpush.bf16.msra.mxu0 %v1845_v16 }
  0x13   :  { %1121 = vmatpush.bf16.msra.mxu1 %v1853_v17 }
  0x14   :  { %8 = vsyncpa [#allocation3], 0  ;;  %1134 = vmatpush.bf16.msra.mxu2 %v1861_v18  ;;  %v1860_v23 = vld [vmem:[%s2438_s1 + $0x90] sm:$0xff]  ;;  %v1843_v25 = vld [vmem:[%s2438_s1 + $0x8] sm:$0xff]  ;;  %s1321_s4 = sshll.u32 %s2440_s3, 4  ;;  %vm1312_vm0 = vcmask 74752   ;;  %s1322_s4 = int_to_ptr.hbm [resolvable:$true] %s1321_s4 }
  0x15   :  { %1147 = vmatpush.bf16.msra.mxu3 %v1869_v19  ;;  %v1868_v24 = vld [vmem:[%s2438_s1 + $0xd0] sm:$0xff]  ;;  %v1851_v26 = vld [vmem:[%s2438_s1 + $0x48] sm:$0xff]  ;;  %v1842_v29 = vld [vmem:[%s2438_s1] sm:$0xff] }
  0x16   :  { %1109 = vmatpush.bf16.msra.mxu0 %v1844_v20  ;;  %v1859_v27 = vld [vmem:[%s2438_s1 + $0x88] sm:$0xff]  ;;  %v1850_v30 = vld [vmem:[%s2438_s1 + $0x40] sm:$0xff]  ;;  %v17_v31 = vld [vmem:[%s2437_s0 + $0x10] sm:$0xff] }
  0x17   :  { %1122 = vmatpush.bf16.msra.mxu1 %v1852_v21  ;;  %v1867_v28 = vld [vmem:[%s2438_s1 + $0xc8] sm:$0xff]  ;;  %v28_v32 = vld.sshfl [vmem:[#allocation1 + $0x10] sm:$0xff pattern:$0x73625140]  ;;  %v1858_v36 = vld [vmem:[%s2438_s1 + $0x80] sm:$0xff] }
  0x18   :  { %1135 = vmatpush.bf16.msra.mxu2 %v1860_v23  ;;  %v26_v33 = vld.sshfl [vmem:[#allocation1] sm:$0xff pattern:$0x73625140]  ;;  %v29_v34 = vld.sshfl [vmem:[#allocation1 + $0x18] sm:$0xff pattern:$0x73625140]  ;;  %v62_v43 = vpack.c.bf16 %v28_v32, %v28_v32 }
  0x19   :  { %1148 = vmatpush.bf16.msra.mxu3 %v1868_v24  ;;  %v27_v35 = vld.sshfl [vmem:[#allocation1 + $0x8] sm:$0xff pattern:$0x73625140]  ;;  %v1866_v37 = vld [vmem:[%s2438_s1 + $0xc0] sm:$0xff]  ;;  %v1881_v38 = vld [vmem:[%s2438_s1 + $0x138] sm:$0xff]  ;;  %v60_v44 = vpack.c.bf16 %v26_v33, %v26_v33  ;;  %v63_v45 = vpack.c.bf16 %v29_v34, %v29_v34 }
  0x1a   :  { %1110 = vmatpush.bf16.msra.mxu0 %v1843_v25  ;;  %34 = vst [vmem:[#allocation1] ss:$4 sm:$0xff] %v17_v31  ;;  %v1889_v39 = vld [vmem:[%s2438_s1 + $0x178] sm:$0xff]  ;;  %v16_v42 = vld [vmem:[%s2437_s0 + $0x8] sm:$0xff]  ;;  %v61_v46 = vpack.c.bf16 %v27_v35, %v27_v35  ;;  %v1880_v47 = vld [vmem:[%s2438_s1 + $0x130] sm:$0xff] }
  0x1b   :  { %1123 = vmatpush.bf16.msra.mxu1 %v1851_v26  ;;  %v1897_v40 = vld [vmem:[%s2438_s1 + $0x1b8] sm:$0xff]  ;;  %25 = vst [vmem:[#allocation1 + $0x20] ss:$4 sm:$0xff] %v16_v42  ;;  %v1888_v48 = vld [vmem:[%s2438_s1 + $0x170] sm:$0xff]  ;;  %v1879_v51 = vld [vmem:[%s2438_s1 + $0x128] sm:$0xff] }
  0x1c   :  { %1136 = vmatpush.bf16.msra.mxu2 %v1859_v27  ;;  %v1905_v41 = vld [vmem:[%s2438_s1 + $0x1f8] sm:$0xff]  ;;  %v1896_v49 = vld [vmem:[%s2438_s1 + $0x1b0] sm:$0xff]  ;;  %v1887_v52 = vld [vmem:[%s2438_s1 + $0x168] sm:$0xff] }
  0x1d   :  { %1149 = vmatpush.bf16.msra.mxu3 %v1867_v28  ;;  %v1904_v50 = vld [vmem:[%s2438_s1 + $0x1f0] sm:$0xff]  ;;  %v1895_v53 = vld [vmem:[%s2438_s1 + $0x1a8] sm:$0xff]  ;;  %v18_v58 = vld [vmem:[%s2437_s0 + $0x18] sm:$0xff] }
  0x1e   :  { %1111 = vmatpush.bf16.msra.mxu0 %v1842_v29  ;;  %v1903_v54 = vld [vmem:[%s2438_s1 + $0x1e8] sm:$0xff]  ;;  %v1878_v60 = vld [vmem:[%s2438_s1 + $0x120] sm:$0xff]  ;;  %v1877_v0 = vld [vmem:[%s2438_s1 + $0x118] sm:$0xff] }
  0x1f   :  { %1124 = vmatpush.bf16.msra.mxu1 %v1850_v30  ;;  %v1886_v61 = vld [vmem:[%s2438_s1 + $0x160] sm:$0xff]  ;;  %v1885_v1 = vld [vmem:[%s2438_s1 + $0x158] sm:$0xff]  ;;  %v1876_v4 = vld [vmem:[%s2438_s1 + $0x110] sm:$0xff] }
  0x20   :  { %1137 = vmatpush.bf16.msra.mxu2 %v1858_v36  ;;  %v1894_v62 = vld [vmem:[%s2438_s1 + $0x1a0] sm:$0xff]  ;;  %v1893_v2 = vld [vmem:[%s2438_s1 + $0x198] sm:$0xff]  ;;  %v1884_v5 = vld [vmem:[%s2438_s1 + $0x150] sm:$0xff] }
  0x21   :  { %1150 = vmatpush.bf16.msra.mxu3 %v1866_v37  ;;  %1112 = vmatmul.bf16.vlgmr.msra.gmra.mxu0 %v60_v44  ;;  %v1902_v63 = vld [vmem:[%s2438_s1 + $0x1e0] sm:$0xff]  ;;  %v1901_v3 = vld [vmem:[%s2438_s1 + $0x1d8] sm:$0xff]  ;;  %v1892_v6 = vld [vmem:[%s2438_s1 + $0x190] sm:$0xff] }
  0x22   :  { %1156 = vmatpush.bf16.msrb.mxu0 %v1881_v38  ;;  %1125 = vmatmul.bf16.vlgmr.msra.gmra.mxu1 %v61_v46  ;;  %v2160_v55 = vld.sshfl [vmem:[#allocation1 + $0x30] sm:$0xff pattern:$0x73625140]  ;;  %v2162_v56 = vld.sshfl [vmem:[#allocation1 + $0x20] sm:$0xff pattern:$0x73625140] }
  0x23   :  { %1169 = vmatpush.bf16.msrb.mxu1 %v1889_v39  ;;  %1138 = vmatmul.bf16.vlgmr.msra.gmra.mxu2 %v62_v43  ;;  %v2164_v57 = vld.sshfl [vmem:[#allocation1 + $0x38] sm:$0xff pattern:$0x73625140]  ;;  %v2169_v59 = vld.sshfl [vmem:[#allocation1 + $0x28] sm:$0xff pattern:$0x73625140]  ;;  %v66_v20 = vpack.c.bf16 %v2160_v55, %v2160_v55  ;;  %v64_v21 = vpack.c.bf16 %v2162_v56, %v2162_v56 }
  0x24   :  { %1182 = vmatpush.bf16.msrb.mxu2 %v1897_v40  ;;  %1151 = vmatmul.bf16.vlgmr.msra.gmra.mxu3 %v63_v45  ;;  %35 = vst [vmem:[#allocation1 + $0x20] ss:$4 sm:$0xff] %v18_v58  ;;  %v1900_v7 = vld [vmem:[%s2438_s1 + $0x1d0] sm:$0xff]  ;;  %v1875_v8 = vld [vmem:[%s2438_s1 + $0x108] sm:$0xff]  ;;  %v1874_v12 = vld [vmem:[%s2438_s1 + $0x100] sm:$0xff]  ;;  %v67_v22 = vpack.c.bf16 %v2164_v57, %v2164_v57  ;;  %v65_v23 = vpack.c.bf16 %v2169_v59, %v2169_v59 }
  0x25   :  { %1195 = vmatpush.bf16.msrb.mxu3 %v1905_v41  ;;  %v1883_v9 = vld [vmem:[%s2438_s1 + $0x148] sm:$0xff]  ;;  %v1882_v13 = vld [vmem:[%s2438_s1 + $0x140] sm:$0xff]  ;;  %v1913_v16 = vld [vmem:[%s2438_s1 + $0x238] sm:$0xff] }
  0x26   :  { %1157 = vmatpush.bf16.msrb.mxu0 %v1880_v47  ;;  %v1891_v10 = vld [vmem:[%s2438_s1 + $0x188] sm:$0xff]  ;;  %v1890_v14 = vld [vmem:[%s2438_s1 + $0x180] sm:$0xff]  ;;  %v1921_v17 = vld [vmem:[%s2438_s1 + $0x278] sm:$0xff] }
  0x27   :  { %1170 = vmatpush.bf16.msrb.mxu1 %v1888_v48  ;;  %v1899_v11 = vld [vmem:[%s2438_s1 + $0x1c8] sm:$0xff]  ;;  %v1898_v15 = vld [vmem:[%s2438_s1 + $0x1c0] sm:$0xff]  ;;  %v1929_v18 = vld [vmem:[%s2438_s1 + $0x2b8] sm:$0xff] }
  0x28   :  { %1183 = vmatpush.bf16.msrb.mxu2 %v1896_v49  ;;  %v1937_v19 = vld [vmem:[%s2438_s1 + $0x2f8] sm:$0xff]  ;;  %v1912_v24 = vld [vmem:[%s2438_s1 + $0x230] sm:$0xff]  ;;  %v1911_v28 = vld [vmem:[%s2438_s1 + $0x228] sm:$0xff] }
  0x29   :  { %1196 = vmatpush.bf16.msrb.mxu3 %v1904_v50  ;;  %v1920_v25 = vld [vmem:[%s2438_s1 + $0x270] sm:$0xff]  ;;  %v1919_v29 = vld [vmem:[%s2438_s1 + $0x268] sm:$0xff]  ;;  %v1910_v32 = vld [vmem:[%s2438_s1 + $0x220] sm:$0xff] }
  0x2a   :  { %1158 = vmatpush.bf16.msrb.mxu0 %v1879_v51  ;;  %v1928_v26 = vld [vmem:[%s2438_s1 + $0x2b0] sm:$0xff]  ;;  %v1927_v30 = vld [vmem:[%s2438_s1 + $0x2a8] sm:$0xff]  ;;  %v1918_v33 = vld [vmem:[%s2438_s1 + $0x260] sm:$0xff] }
  0x2b   :  { %1171 = vmatpush.bf16.msrb.mxu1 %v1887_v52  ;;  %v1936_v27 = vld [vmem:[%s2438_s1 + $0x2f0] sm:$0xff]  ;;  %v1935_v31 = vld [vmem:[%s2438_s1 + $0x2e8] sm:$0xff]  ;;  %v1926_v34 = vld [vmem:[%s2438_s1 + $0x2a0] sm:$0xff] }
  0x2c   :  { %1184 = vmatpush.bf16.msrb.mxu2 %v1895_v53  ;;  %v1934_v35 = vld [vmem:[%s2438_s1 + $0x2e0] sm:$0xff]  ;;  %v1909_v36 = vld [vmem:[%s2438_s1 + $0x218] sm:$0xff]  ;;  %v1908_v40 = vld [vmem:[%s2438_s1 + $0x210] sm:$0xff] }
  0x2d   :  { %1197 = vmatpush.bf16.msrb.mxu3 %v1903_v54  ;;  %v1917_v37 = vld [vmem:[%s2438_s1 + $0x258] sm:$0xff]  ;;  %v1916_v41 = vld [vmem:[%s2438_s1 + $0x250] sm:$0xff]  ;;  %v1907_v44 = vld [vmem:[%s2438_s1 + $0x208] sm:$0xff] }
  0x2e   :  { %1159 = vmatpush.bf16.msrb.mxu0 %v1878_v60  ;;  %v1925_v38 = vld [vmem:[%s2438_s1 + $0x298] sm:$0xff]  ;;  %v1924_v42 = vld [vmem:[%s2438_s1 + $0x290] sm:$0xff]  ;;  %v1915_v45 = vld [vmem:[%s2438_s1 + $0x248] sm:$0xff] }
  0x2f   :  { %1172 = vmatpush.bf16.msrb.mxu1 %v1886_v61  ;;  %v1933_v39 = vld [vmem:[%s2438_s1 + $0x2d8] sm:$0xff]  ;;  %v1932_v43 = vld [vmem:[%s2438_s1 + $0x2d0] sm:$0xff]  ;;  %v1923_v46 = vld [vmem:[%s2438_s1 + $0x288] sm:$0xff] }
  0x30   :  { %1185 = vmatpush.bf16.msrb.mxu2 %v1894_v62  ;;  %v1931_v47 = vld [vmem:[%s2438_s1 + $0x2c8] sm:$0xff]  ;;  %v1906_v48 = vld [vmem:[%s2438_s1 + $0x200] sm:$0xff]  ;;  %v1945_v52 = vld [vmem:[%s2438_s1 + $0x338] sm:$0xff] }
  0x31   :  { %1198 = vmatpush.bf16.msrb.mxu3 %v1902_v63  ;;  %v1914_v49 = vld [vmem:[%s2438_s1 + $0x240] sm:$0xff]  ;;  %v1953_v53 = vld [vmem:[%s2438_s1 + $0x378] sm:$0xff]  ;;  %v38_v55 = vld.sshfl [vmem:[#allocation1 + $0x10] sm:$0xff pattern:$0x73625140] }
  0x32   :  { %1160 = vmatpush.bf16.msrb.mxu0 %v1877_v0  ;;  %v1922_v50 = vld [vmem:[%s2438_s1 + $0x280] sm:$0xff]  ;;  %v37_v56 = vld.sshfl [vmem:[#allocation1 + $0x8] sm:$0xff pattern:$0x73625140]  ;;  %v1961_v58 = vld [vmem:[%s2438_s1 + $0x3b8] sm:$0xff]  ;;  %v70_v61 = vpack.c.bf16 %v38_v55, %v38_v55 }
  0x33   :  { %1173 = vmatpush.bf16.msrb.mxu1 %v1885_v1  ;;  %v1930_v51 = vld [vmem:[%s2438_s1 + $0x2c0] sm:$0xff]  ;;  %v39_v57 = vld.sshfl [vmem:[#allocation1 + $0x18] sm:$0xff pattern:$0x73625140]  ;;  %v69_v62 = vpack.c.bf16 %v37_v56, %v37_v56  ;;  %v1944_v0 = vld [vmem:[%s2438_s1 + $0x330] sm:$0xff] }
  0x34   :  { %1186 = vmatpush.bf16.msrb.mxu2 %v1893_v2  ;;  %v36_v54 = vld.sshfl [vmem:[#allocation1] sm:$0xff pattern:$0x73625140]  ;;  %v1969_v59 = vld [vmem:[%s2438_s1 + $0x3f8] sm:$0xff]  ;;  %v71_v63 = vpack.c.bf16 %v39_v57, %v39_v57  ;;  %v1952_v1 = vld [vmem:[%s2438_s1 + $0x370] sm:$0xff] }
  0x35   :  { %1199 = vmatpush.bf16.msrb.mxu3 %v1901_v3  ;;  %v68_v60 = vpack.c.bf16 %v36_v54, %v36_v54  ;;  %v1960_v2 = vld [vmem:[%s2438_s1 + $0x3b0] sm:$0xff] }
  0x36   :  { %1161 = vmatpush.bf16.msrb.mxu0 %v1876_v4  ;;  %v1968_v3 = vld [vmem:[%s2438_s1 + $0x3f0] sm:$0xff]  ;;  %v1943_v4 = vld [vmem:[%s2438_s1 + $0x328] sm:$0xff] }
  0x37   :  { %1174 = vmatpush.bf16.msrb.mxu1 %v1884_v5  ;;  %v1951_v5 = vld [vmem:[%s2438_s1 + $0x368] sm:$0xff] }
  0x38   :  { %1187 = vmatpush.bf16.msrb.mxu2 %v1892_v6  ;;  %v1959_v6 = vld [vmem:[%s2438_s1 + $0x3a8] sm:$0xff] }
  0x39   :  { %1200 = vmatpush.bf16.msrb.mxu3 %v1900_v7  ;;  %v1967_v7 = vld [vmem:[%s2438_s1 + $0x3e8] sm:$0xff] }
  0x3a   :  { %1162 = vmatpush.bf16.msrb.mxu0 %v1875_v8  ;;  %v1942_v8 = vld [vmem:[%s2438_s1 + $0x320] sm:$0xff] }
  0x3b   :  { %1175 = vmatpush.bf16.msrb.mxu1 %v1883_v9  ;;  %v1950_v9 = vld [vmem:[%s2438_s1 + $0x360] sm:$0xff] }
  0x3c   :  { %1188 = vmatpush.bf16.msrb.mxu2 %v1891_v10  ;;  %v1958_v10 = vld [vmem:[%s2438_s1 + $0x3a0] sm:$0xff] }
  0x3d   :  { %1201 = vmatpush.bf16.msrb.mxu3 %v1899_v11  ;;  %v1966_v11 = vld [vmem:[%s2438_s1 + $0x3e0] sm:$0xff] }
  0x3e   :  { %1163 = vmatpush.bf16.msrb.mxu0 %v1874_v12  ;;  %v1941_v12 = vld [vmem:[%s2438_s1 + $0x318] sm:$0xff] }
  0x3f   :  { %1176 = vmatpush.bf16.msrb.mxu1 %v1882_v13  ;;  %v1949_v13 = vld [vmem:[%s2438_s1 + $0x358] sm:$0xff] }
  0x40   :  { %1189 = vmatpush.bf16.msrb.mxu2 %v1890_v14  ;;  %v1957_v14 = vld [vmem:[%s2438_s1 + $0x398] sm:$0xff] }
  0x41   :  { %1202 = vmatpush.bf16.msrb.mxu3 %v1898_v15  ;;  %1164 = vmatmul.bf16.vlgmr.msrb.gmra.mxu0 %v64_v21  ;;  %v1965_v15 = vld [vmem:[%s2438_s1 + $0x3d8] sm:$0xff]  ;;  %v1947_v21 = vld [vmem:[%s2438_s1 + $0x348] sm:$0xff] }
  0x42   :  { %1208 = vmatpush.bf16.msra.mxu0 %v1913_v16  ;;  %1177 = vmatmul.bf16.vlgmr.msrb.gmra.mxu1 %v65_v23  ;;  %v1940_v16 = vld [vmem:[%s2438_s1 + $0x310] sm:$0xff]  ;;  %v1963_v23 = vld [vmem:[%s2438_s1 + $0x3c8] sm:$0xff] }
  0x43   :  { %1221 = vmatpush.bf16.msra.mxu1 %v1921_v17  ;;  %1190 = vmatmul.bf16.vlgmr.msrb.gmra.mxu2 %v66_v20  ;;  %v1948_v17 = vld [vmem:[%s2438_s1 + $0x350] sm:$0xff]  ;;  %v1939_v20 = vld [vmem:[%s2438_s1 + $0x308] sm:$0xff] }
  0x44   :  { %1234 = vmatpush.bf16.msra.mxu2 %v1929_v18  ;;  %1203 = vmatmul.bf16.vlgmr.msrb.gmra.mxu3 %v67_v22  ;;  %v1956_v18 = vld [vmem:[%s2438_s1 + $0x390] sm:$0xff]  ;;  %v1955_v22 = vld [vmem:[%s2438_s1 + $0x388] sm:$0xff] }
  0x45   :  { %1247 = vmatpush.bf16.msra.mxu3 %v1937_v19  ;;  %v1964_v19 = vld [vmem:[%s2438_s1 + $0x3d0] sm:$0xff] }
  0x46   :  { %1209 = vmatpush.bf16.msra.mxu0 %v1912_v24  ;;  %v1938_v24 = vld [vmem:[%s2438_s1 + $0x300] sm:$0xff] }
  0x47   :  { %1222 = vmatpush.bf16.msra.mxu1 %v1920_v25  ;;  %v1946_v25 = vld [vmem:[%s2438_s1 + $0x340] sm:$0xff] }
  0x48   :  { %1235 = vmatpush.bf16.msra.mxu2 %v1928_v26  ;;  %v1954_v26 = vld [vmem:[%s2438_s1 + $0x380] sm:$0xff] }
  0x49   :  { %1248 = vmatpush.bf16.msra.mxu3 %v1936_v27  ;;  %v1962_v27 = vld [vmem:[%s2438_s1 + $0x3c0] sm:$0xff] }
  0x4a   :  { %1210 = vmatpush.bf16.msra.mxu0 %v1911_v28  ;;  %v40_v28 = vld.sshfl [vmem:[#allocation1 + $0x20] sm:$0xff pattern:$0x73625140] }
  0x4b   :  { %1223 = vmatpush.bf16.msra.mxu1 %v1919_v29  ;;  %v41_v29 = vld.sshfl [vmem:[#allocation1 + $0x28] sm:$0xff pattern:$0x73625140] }
  0x4c   :  { %1236 = vmatpush.bf16.msra.mxu2 %v1927_v30  ;;  %v42_v30 = vld.sshfl [vmem:[#allocation1 + $0x30] sm:$0xff pattern:$0x73625140] }
  0x4d   :  { %1249 = vmatpush.bf16.msra.mxu3 %v1935_v31  ;;  %v43_v31 = vld.sshfl [vmem:[#allocation1 + $0x38] sm:$0xff pattern:$0x73625140] }
  0x4e   :  { %1211 = vmatpush.bf16.msra.mxu0 %v1910_v32  ;;  %v72_v32 = vpack.c.bf16 %v40_v28, %v40_v28 }
  0x4f   :  { %1224 = vmatpush.bf16.msra.mxu1 %v1918_v33  ;;  %v73_v33 = vpack.c.bf16 %v41_v29, %v41_v29 }
  0x50   :  { %1237 = vmatpush.bf16.msra.mxu2 %v1926_v34  ;;  %v74_v34 = vpack.c.bf16 %v42_v30, %v42_v30 }
  0x51   :  { %1250 = vmatpush.bf16.msra.mxu3 %v1934_v35  ;;  %v75_v35 = vpack.c.bf16 %v43_v31, %v43_v31 }
  0x52   :  { %1212 = vmatpush.bf16.msra.mxu0 %v1909_v36  ;;  %v1971_v36 = vld [vmem:[%s2439_s2] ss:$0 sm:$0xff]  ;;  %s1998_s2 = smov [#allocation2]  }
  0x53   :  { %1225 = vmatpush.bf16.msra.mxu1 %v1917_v37  ;;  %s1319_s28 = sshll.u32 %s1998_s2, 4  ;;  %s1320_s28 = int_to_ptr.vmem [resolvable:$true] %s1319_s28 }
  0x54   :  { %1238 = vmatpush.bf16.msra.mxu2 %v1925_v38 }
  0x55   :  { %1251 = vmatpush.bf16.msra.mxu3 %v1933_v39 }
  0x56   :  { %1213 = vmatpush.bf16.msra.mxu0 %v1908_v40 }
  0x57   :  { %1226 = vmatpush.bf16.msra.mxu1 %v1916_v41 }
  0x58   :  { %1239 = vmatpush.bf16.msra.mxu2 %v1924_v42 }
  0x59   :  { %1252 = vmatpush.bf16.msra.mxu3 %v1932_v43 }
  0x5a   :  { %1214 = vmatpush.bf16.msra.mxu0 %v1907_v44 }
  0x5b   :  { %1227 = vmatpush.bf16.msra.mxu1 %v1915_v45 }
  0x5c   :  { %1240 = vmatpush.bf16.msra.mxu2 %v1923_v46 }
  0x5d   :  { %1253 = vmatpush.bf16.msra.mxu3 %v1931_v47 }
  0x5e   :  { %1215 = vmatpush.bf16.msra.mxu0 %v1906_v48 }
  0x5f   :  { %1228 = vmatpush.bf16.msra.mxu1 %v1914_v49 }
  0x60   :  { %1241 = vmatpush.bf16.msra.mxu2 %v1922_v50 }
  0x61   :  { %1254 = vmatpush.bf16.msra.mxu3 %v1930_v51  ;;  %1216 = vmatmul.bf16.vlgmr.msra.gmra.mxu0 %v68_v60 }
  0x62   :  { %1260 = vmatpush.bf16.msrb.mxu0 %v1945_v52  ;;  %1229 = vmatmul.bf16.vlgmr.msra.gmra.mxu1 %v69_v62 }
  0x63   :  { %1273 = vmatpush.bf16.msrb.mxu1 %v1953_v53  ;;  %1242 = vmatmul.bf16.vlgmr.msra.gmra.mxu2 %v70_v61 }
  0x64   :  { %1286 = vmatpush.bf16.msrb.mxu2 %v1961_v58  ;;  %1255 = vmatmul.bf16.vlgmr.msra.gmra.mxu3 %v71_v63 }
  0x65   :  { %1299 = vmatpush.bf16.msrb.mxu3 %v1969_v59 }
  0x66   :  { %1261 = vmatpush.bf16.msrb.mxu0 %v1944_v0 }
  0x67   :  { %1274 = vmatpush.bf16.msrb.mxu1 %v1952_v1 }
  0x68   :  { %1287 = vmatpush.bf16.msrb.mxu2 %v1960_v2 }
  0x69   :  { %1300 = vmatpush.bf16.msrb.mxu3 %v1968_v3 }
  0x6a   :  { %1262 = vmatpush.bf16.msrb.mxu0 %v1943_v4 }
  0x6b   :  { %1275 = vmatpush.bf16.msrb.mxu1 %v1951_v5 }
  0x6c   :  { %1288 = vmatpush.bf16.msrb.mxu2 %v1959_v6 }
  0x6d   :  { %1301 = vmatpush.bf16.msrb.mxu3 %v1967_v7 }
  0x6e   :  { %1263 = vmatpush.bf16.msrb.mxu0 %v1942_v8 }
  0x6f   :  { %1276 = vmatpush.bf16.msrb.mxu1 %v1950_v9 }
  0x70   :  { %1289 = vmatpush.bf16.msrb.mxu2 %v1958_v10 }
  0x71   :  { %1302 = vmatpush.bf16.msrb.mxu3 %v1966_v11 }
  0x72   :  { %1264 = vmatpush.bf16.msrb.mxu0 %v1941_v12 }
  0x73   :  { %1277 = vmatpush.bf16.msrb.mxu1 %v1949_v13 }
  0x74   :  { %1290 = vmatpush.bf16.msrb.mxu2 %v1957_v14 }
  0x75   :  { %1303 = vmatpush.bf16.msrb.mxu3 %v1965_v15 }
  0x76   :  { %1265 = vmatpush.bf16.msrb.mxu0 %v1940_v16 }
  0x77   :  { %1278 = vmatpush.bf16.msrb.mxu1 %v1948_v17 }
  0x78   :  { %1291 = vmatpush.bf16.msrb.mxu2 %v1956_v18 }
  0x79   :  { %1304 = vmatpush.bf16.msrb.mxu3 %v1964_v19 }
  0x7a   :  { %1266 = vmatpush.bf16.msrb.mxu0 %v1939_v20 }
  0x7b   :  { %1279 = vmatpush.bf16.msrb.mxu1 %v1947_v21 }
  0x7c   :  { %1292 = vmatpush.bf16.msrb.mxu2 %v1955_v22 }
  0x7d   :  { %1305 = vmatpush.bf16.msrb.mxu3 %v1963_v23 }
  0x7e   :  { %1267 = vmatpush.bf16.msrb.mxu0 %v1938_v24 }
  0x7f   :  { %1280 = vmatpush.bf16.msrb.mxu1 %v1946_v25 }
  0x80   :  { %1293 = vmatpush.bf16.msrb.mxu2 %v1954_v26 }
  0x81   :  { %1306 = vmatpush.bf16.msrb.mxu3 %v1962_v27  ;;  %1268 = vmatmul.bf16.vlgmr.msrb.gmra.mxu0 %v72_v32 }
  0x82   :  { %1281 = vmatmul.bf16.vlgmr.msrb.gmra.mxu1 %v73_v33 }
  0x83   :  { %1294 = vmatmul.bf16.vlgmr.msrb.gmra.mxu2 %v74_v34 }
  0x84   :  { %1307 = vmatmul.bf16.vlgmr.msrb.gmra.mxu3 %v75_v35 }
  0x9e   :  { %v1113_v37 = vpop.f32.mrf.mxu0 }
  0x9f   :  { %v1114_v38 = vadd.f32 %v1971_v36, %v1113_v37  ;;  %v1126_v39 = vpop.f32.mrf.mxu1 }
  0xa1   :  { %v1127_v40 = vadd.f32 %v1126_v39, %v1114_v38 }
  0xa6   :  { %v1139_v41 = vpop.f32.mrf.mxu2  ;;  %v1115_v44 = vpop.f32.mrf.mxu0 }
  0xa7   :  { %v1140_v42 = vadd.f32 %v1139_v41, %v1127_v40  ;;  %v1152_v43 = vpop.f32.mrf.mxu3  ;;  %v1128_v46 = vpop.f32.mrf.mxu1 }
  0xa9   :  { %v1153_v45 = vadd.f32 %v1152_v43, %v1140_v42 }
  0xae   :  { %v1141_v47 = vpop.f32.mrf.mxu2 }
  0xaf   :  { %v1154_v48 = vpop.f32.mrf.mxu3 }
  0xbe   :  { %v1165_v49 = vpop.f32.mrf.mxu0 }
  0xbf   :  { %v1178_v50 = vpop.f32.mrf.mxu1  ;;  %v1166_v59 = vadd.f32 %v1165_v49, %v1153_v45 }
  0xc1   :  { %v1179_v63 = vadd.f32 %v1178_v50, %v1166_v59 }
  0xc6   :  { %v1191_v51 = vpop.f32.mrf.mxu2  ;;  %v1167_v53 = vpop.f32.mrf.mxu0 }
  0xc7   :  { %v1204_v52 = vpop.f32.mrf.mxu3  ;;  %v1180_v54 = vpop.f32.mrf.mxu1  ;;  %v1192_v1 = vadd.f32 %v1191_v51, %v1179_v63 }
  0xc9   :  { %v1205_v4 = vadd.f32 %v1204_v52, %v1192_v1 }
  0xce   :  { %v1193_v55 = vpop.f32.mrf.mxu2 }
  0xcf   :  { %v1206_v56 = vpop.f32.mrf.mxu3 }
  0xde   :  { %v1217_v57 = vpop.f32.mrf.mxu0 }
  0xdf   :  { %v1230_v58 = vpop.f32.mrf.mxu1  ;;  %v1218_v5 = vadd.f32 %v1217_v57, %v1205_v4 }
  0xe1   :  { %v1231_v6 = vadd.f32 %v1230_v58, %v1218_v5 }
  0xe6   :  { %v1243_v60 = vpop.f32.mrf.mxu2  ;;  %v1219_v62 = vpop.f32.mrf.mxu0 }
  0xe7   :  { %v1256_v61 = vpop.f32.mrf.mxu3  ;;  %v1232_v0 = vpop.f32.mrf.mxu1  ;;  %v1244_v7 = vadd.f32 %v1243_v60, %v1231_v6 }
  0xe9   :  { %v1257_v8 = vadd.f32 %v1256_v61, %v1244_v7 }
  0xee   :  { %v1245_v2 = vpop.f32.mrf.mxu2 }
  0xef   :  { %v1258_v3 = vpop.f32.mrf.mxu3 }
  0xfe   :  { %v1269_v9 = vpop.f32.mrf.mxu0 }
  0xff   :  { %v1282_v10 = vpop.f32.mrf.mxu1  ;;  %v1270_v11 = vadd.f32 %v1269_v9, %v1257_v8 }
 0x101   :  { %v1283_v12 = vadd.f32 %v1282_v10, %v1270_v11 }
 0x106   :  { %v1295_v13 = vpop.f32.mrf.mxu2  ;;  %v1271_v16 = vpop.f32.mrf.mxu0 }
 0x107   :  { %v1308_v14 = vpop.f32.mrf.mxu3  ;;  %v1296_v15 = vadd.f32 %v1295_v13, %v1283_v12  ;;  %v1284_v17 = vpop.f32.mrf.mxu1 }
 0x109   :  { %v1309_v18 = vadd.f32 %v1308_v14, %v1296_v15 }
 0x10b   :  { %1313 = vst.msk [vmem:[#allocation2] sm:$0x3] %vm1312_vm0, %v1309_v18 }
 0x10c   :  { %1324 = dma.vmem_to_hbm [thread:$0]  %s1320_s28, 32, %s1322_s4, [#allocation3]  }
 0x10e   :  { %v1297_v19 = vpop.f32.mrf.mxu2 }
 0x10f   :  { %v1310_v20 = vpop.f32.mrf.mxu3 }
 0x110   :  { %1996 = dma.done.wait [#allocation3], 32  }
 0x111   :  { %1997 = vsyncadd [#allocation3], 4294967264 }
 0x112   :  { %1329 = vsyncpa [#allocation3], 1 }

</bundles_post_ra>
